<compile_context>
chip_gen: v7x
topology: tpu7x:2x2x1
jax: 0.10.0
libtpu: 0.0.40
codegen_flags: <defaults>
</compile_context>

<pallas_src>
import functools

import jax
import jax.numpy as jnp
from jax.experimental import pallas as pl
from jax.experimental.pallas import tpu as pltpu

NEG_SLOPE = 0.01          # torch.nn.LeakyReLU default
IN_FEATURES = 6
HIDDEN = 256
NUM_CLASSES = 7
OUT_PAD = 8               # pad 7 classes -> 8 lanes (last block dim == array dim)
TB_MAX = 2048             # batch tile upper bound (multiple of 256)


def _round_up(n, m):
    return ((n + m - 1) // m) * m


def _leaky_relu(v):
    return jnp.where(v > 0, v, NEG_SLOPE * v)


def _mlp_kernel(x_ref,
                w1_ref, b1_ref, w2_ref, b2_ref, w3_ref, b3_ref,
                w4_ref, b4_ref, w5_ref, b5_ref, o_ref):
    """One batch tile per grid step; weights are VMEM-resident across steps."""
    h = jnp.dot(x_ref[...].astype(jnp.bfloat16), w1_ref[...],
                preferred_element_type=jnp.float32)
    h = _leaky_relu(h + b1_ref[...]).astype(jnp.bfloat16)

    h = jnp.dot(h, w2_ref[...], preferred_element_type=jnp.float32)
    h = _leaky_relu(h + b2_ref[...]).astype(jnp.bfloat16)

    h = jnp.dot(h, w3_ref[...], preferred_element_type=jnp.float32)
    h = _leaky_relu(h + b3_ref[...]).astype(jnp.bfloat16)

    h = jnp.dot(h, w4_ref[...], preferred_element_type=jnp.float32)
    h = _leaky_relu(h + b4_ref[...]).astype(jnp.bfloat16)

    out = jnp.dot(h, w5_ref[...], preferred_element_type=jnp.float32) + b5_ref[...]
    o_ref[...] = out.astype(o_ref.dtype)   # (TB, 8) store, only 8 lanes of HBM


def prepare_params(params):
    """Cast weights to bf16, biases to f32 (1, out); pad last layer to 8 lanes."""
    flat = []
    last = len(params) - 1
    for i, (w, b) in enumerate(params):
        w = w.astype(jnp.bfloat16)
        b = b.reshape(1, -1).astype(jnp.float32)
        if i == last:
            w = jnp.pad(w, ((0, 0), (0, OUT_PAD - w.shape[1])))
            b = jnp.pad(b, ((0, 0), (0, OUT_PAD - b.shape[1])))
        flat.extend([w, b])
    return flat


@functools.partial(jax.jit, static_argnames=("tb_max",))
def affine_classifier_forward(x, flat_params, tb_max=TB_MAX):
    """x: (B, 6) float32 or bfloat16; flat_params: [w1,b1,...,w5,b5]."""
    batch = x.shape[0]

    # Tile selection:
    #   * rows padded to a multiple of 8 (sublane granularity)
    #   * at least 2 tiles whenever batch > 8 so v7x's 2 TCs are both used
    #   * tile count chosen via cdiv to minimize padded/wasted rows
    b8 = _round_up(batch, 8)
    n_tiles = pl.cdiv(b8, tb_max)
    if b8 > 8:
        n_tiles = max(n_tiles, 2)
    tb = _round_up(pl.cdiv(b8, n_tiles), 8)
    padded_b = tb * n_tiles
    if padded_b != batch:
        x = jnp.pad(x, ((0, padded_b - batch), (0, 0)))

    x_spec = pl.BlockSpec((tb, IN_FEATURES), lambda i: (i, 0))
    out_spec = pl.BlockSpec((tb, OUT_PAD), lambda i: (i, 0))
    # Weights/biases: whole-array blocks with a constant index_map -> stay
    # resident in VMEM across all grid steps (~0.4 MiB total in bf16).
    param_specs = [pl.BlockSpec(p.shape, lambda i: (0, 0)) for p in flat_params]

    flops = 2 * padded_b * (IN_FEATURES * HIDDEN
                            + 3 * HIDDEN * HIDDEN
                            + HIDDEN * OUT_PAD)
    param_bytes = sum(int(p.size) * p.dtype.itemsize for p in flat_params)
    bytes_accessed = (padded_b * IN_FEATURES * x.dtype.itemsize
                      + param_bytes
                      + padded_b * OUT_PAD * 4)

    out = pl.pallas_call(
        _mlp_kernel,
        out_shape=jax.ShapeDtypeStruct((padded_b, OUT_PAD), jnp.float32),
        grid=(n_tiles,),
        in_specs=[x_spec] + param_specs,
        out_specs=out_spec,
        compiler_params=pltpu.CompilerParams(
            dimension_semantics=("parallel",),          # both TCs on v7x
            vmem_limit_bytes=32 * 1024 * 1024),         # safe on v5e/v6e/v7x
        cost_estimate=pl.CostEstimate(
            flops=flops, transcendentals=0, bytes_accessed=bytes_accessed),
    )(x, *flat_params)
    return out[:batch, :NUM_CLASSES]


def init_params(key):
    """Deterministic init mimicking PyTorch Linear default (U(-1/sqrt(fan_in), ..))."""
    dims = [(IN_FEATURES, HIDDEN), (HIDDEN, HIDDEN), (HIDDEN, HIDDEN),
            (HIDDEN, HIDDEN), (HIDDEN, NUM_CLASSES)]
    params = []
    for (fan_in, fan_out) in dims:
        key, kw, kb = jax.random.split(key, 3)
        bound = 1.0 / jnp.sqrt(jnp.float32(fan_in))
        w = jax.random.uniform(kw, (fan_in, fan_out), jnp.float32, -bound, bound)
        b = jax.random.uniform(kb, (1, fan_out), jnp.float32, -bound, bound)
        params.append((w, b))
    return params


def reference_forward(x, flat_params):
    """Same bf16-weight/activation, f32-accumulate math as the kernel, in plain jnp."""
    h = x
    n = len(flat_params)
    for i in range(0, n, 2):
        w, b = flat_params[i], flat_params[i + 1]
        h = jnp.dot(h.astype(jnp.bfloat16), w,
                    preferred_element_type=jnp.float32) + b
        if i < n - 2:
            h = _leaky_relu(h).astype(jnp.bfloat16)
    return h[:, :NUM_CLASSES].astype(jnp.float32)


if __name__ == "__main__":
    key = jax.random.PRNGKey(0)
    key, kx1, kx2 = jax.random.split(key, 3)

    params = init_params(key)
    flat = prepare_params(params)

    # Small test (single tile).
    batch = 8
    x = jax.random.normal(kx1, (batch, IN_FEATURES), jnp.float32)
    out = jax.block_until_ready(affine_classifier_forward(x, flat))
    ref = reference_forward(x, flat)
    assert out.shape == (batch, NUM_CLASSES), out.shape
    assert jnp.allclose(out, ref, atol=1e-2, rtol=1e-2), (
        float(jnp.max(jnp.abs(out - ref))))

    # Ragged multi-tile test (exercises >=2 grid steps + batch padding path).
    batch2 = 300
    x2 = jax.random.normal(kx2, (batch2, IN_FEATURES), jnp.float32)
    out2 = jax.block_until_ready(affine_classifier_forward(x2, flat))
    ref2 = reference_forward(x2, flat)
    assert out2.shape == (batch2, NUM_CLASSES), out2.shape
    assert jnp.allclose(out2, ref2, atol=1e-2, rtol=1e-2), (
        float(jnp.max(jnp.abs(out2 - ref2))))

    print("KERNEL_OK")
</pallas_src>

<mosaic_0001>
module attributes {stable_mosaic.version = 11 : i64} {
  func.func @_mlp_kernel(%arg0: i32, %arg1: memref<8x6xf32, #tpu.memory_space<vmem>>, %arg2: memref<6x256xbf16, #tpu.memory_space<vmem>>, %arg3: memref<1x256xf32, #tpu.memory_space<vmem>>, %arg4: memref<256x256xbf16, #tpu.memory_space<vmem>>, %arg5: memref<1x256xf32, #tpu.memory_space<vmem>>, %arg6: memref<256x256xbf16, #tpu.memory_space<vmem>>, %arg7: memref<1x256xf32, #tpu.memory_space<vmem>>, %arg8: memref<256x256xbf16, #tpu.memory_space<vmem>>, %arg9: memref<1x256xf32, #tpu.memory_space<vmem>>, %arg10: memref<256x8xbf16, #tpu.memory_space<vmem>>, %arg11: memref<1x8xf32, #tpu.memory_space<vmem>>, %arg12: memref<8x8xf32, #tpu.memory_space<vmem>>) attributes {dimension_semantics = [#tpu.dimension_semantics<parallel>], iteration_bounds = array<i64: 1>, scalar_prefetch = 0 : i64, scratch_operands = 0 : i64, tpu.core_type = #tpu.core_type<tc>, window_params = [{transform_indices = @transform_0, window_bounds = array<i64: 8, 6>}, {pipeline_mode = #tpu.pipeline_mode<synchronous>, transform_indices = @transform_1, window_bounds = array<i64: 6, 256>}, {pipeline_mode = #tpu.pipeline_mode<synchronous>, transform_indices = @transform_2, window_bounds = array<i64: 1, 256>}, {pipeline_mode = #tpu.pipeline_mode<synchronous>, transform_indices = @transform_3, window_bounds = array<i64: 256, 256>}, {pipeline_mode = #tpu.pipeline_mode<synchronous>, transform_indices = @transform_4, window_bounds = array<i64: 1, 256>}, {pipeline_mode = #tpu.pipeline_mode<synchronous>, transform_indices = @transform_5, window_bounds = array<i64: 256, 256>}, {pipeline_mode = #tpu.pipeline_mode<synchronous>, transform_indices = @transform_6, window_bounds = array<i64: 1, 256>}, {pipeline_mode = #tpu.pipeline_mode<synchronous>, transform_indices = @transform_7, window_bounds = array<i64: 256, 256>}, {pipeline_mode = #tpu.pipeline_mode<synchronous>, transform_indices = @transform_8, window_bounds = array<i64: 1, 256>}, {pipeline_mode = #tpu.pipeline_mode<synchronous>, transform_indices = @transform_9, window_bounds = array<i64: 256, 8>}, {pipeline_mode = #tpu.pipeline_mode<synchronous>, transform_indices = @transform_10, window_bounds = array<i64: 1, 8>}, {transform_indices = @transform_11, window_bounds = array<i64: 8, 8>}]} {
    %c0 = arith.constant 0 : index
    %c0_0 = arith.constant 0 : index
    %0 = vector.load %arg1[%c0, %c0_0] : memref<8x6xf32, #tpu.memory_space<vmem>>, vector<8x6xf32>
    %1 = arith.truncf %0 : vector<8x6xf32> to vector<8x6xbf16>
    %c0_1 = arith.constant 0 : index
    %c0_2 = arith.constant 0 : index
    %2 = vector.load %arg2[%c0_1, %c0_2] : memref<6x256xbf16, #tpu.memory_space<vmem>>, vector<6x256xbf16>
    %cst = arith.constant dense<0.000000e+00> : vector<8x256xf32>
    %3 = tpu.matmul %1, %2, %cst {dimension_numbers = #tpu.dot_dimension_numbers<[1], [0], [0], [1], [0, 0, 1, 1], [], []>} : vector<8x6xbf16>, vector<6x256xbf16>, vector<8x256xf32> -> vector<8x256xf32>
    %c0_3 = arith.constant 0 : index
    %c0_4 = arith.constant 0 : index
    %4 = vector.load %arg3[%c0_3, %c0_4] : memref<1x256xf32, #tpu.memory_space<vmem>>, vector<1x256xf32>
    %5 = vector.broadcast %4 : vector<1x256xf32> to vector<8x256xf32>
    %6 = arith.addf %3, %5 : vector<8x256xf32>
    %cst_5 = arith.constant 0.000000e+00 : f32
    %7 = vector.broadcast %cst_5 : f32 to vector<8x256xf32>
    %8 = arith.cmpf ogt, %6, %7 : vector<8x256xf32>
    %cst_6 = arith.constant 0.00999999977 : f32
    %9 = vector.broadcast %cst_6 : f32 to vector<8x256xf32>
    %10 = arith.mulf %9, %6 : vector<8x256xf32>
    %11 = arith.select %8, %6, %10 : vector<8x256xi1>, vector<8x256xf32>
    %12 = arith.truncf %11 : vector<8x256xf32> to vector<8x256xbf16>
    %c0_7 = arith.constant 0 : index
    %c0_8 = arith.constant 0 : index
    %13 = vector.load %arg4[%c0_7, %c0_8] : memref<256x256xbf16, #tpu.memory_space<vmem>>, vector<256x256xbf16>
    %cst_9 = arith.constant dense<0.000000e+00> : vector<8x256xf32>
    %14 = tpu.matmul %12, %13, %cst_9 {dimension_numbers = #tpu.dot_dimension_numbers<[1], [0], [0], [1], [0, 0, 1, 1], [], []>} : vector<8x256xbf16>, vector<256x256xbf16>, vector<8x256xf32> -> vector<8x256xf32>
    %c0_10 = arith.constant 0 : index
    %c0_11 = arith.constant 0 : index
    %15 = vector.load %arg5[%c0_10, %c0_11] : memref<1x256xf32, #tpu.memory_space<vmem>>, vector<1x256xf32>
    %16 = vector.broadcast %15 : vector<1x256xf32> to vector<8x256xf32>
    %17 = arith.addf %14, %16 : vector<8x256xf32>
    %cst_12 = arith.constant 0.000000e+00 : f32
    %18 = vector.broadcast %cst_12 : f32 to vector<8x256xf32>
    %19 = arith.cmpf ogt, %17, %18 : vector<8x256xf32>
    %cst_13 = arith.constant 0.00999999977 : f32
    %20 = vector.broadcast %cst_13 : f32 to vector<8x256xf32>
    %21 = arith.mulf %20, %17 : vector<8x256xf32>
    %22 = arith.select %19, %17, %21 : vector<8x256xi1>, vector<8x256xf32>
    %23 = arith.truncf %22 : vector<8x256xf32> to vector<8x256xbf16>
    %c0_14 = arith.constant 0 : index
    %c0_15 = arith.constant 0 : index
    %24 = vector.load %arg6[%c0_14, %c0_15] : memref<256x256xbf16, #tpu.memory_space<vmem>>, vector<256x256xbf16>
    %cst_16 = arith.constant dense<0.000000e+00> : vector<8x256xf32>
    %25 = tpu.matmul %23, %24, %cst_16 {dimension_numbers = #tpu.dot_dimension_numbers<[1], [0], [0], [1], [0, 0, 1, 1], [], []>} : vector<8x256xbf16>, vector<256x256xbf16>, vector<8x256xf32> -> vector<8x256xf32>
    %c0_17 = arith.constant 0 : index
    %c0_18 = arith.constant 0 : index
    %26 = vector.load %arg7[%c0_17, %c0_18] : memref<1x256xf32, #tpu.memory_space<vmem>>, vector<1x256xf32>
    %27 = vector.broadcast %26 : vector<1x256xf32> to vector<8x256xf32>
    %28 = arith.addf %25, %27 : vector<8x256xf32>
    %cst_19 = arith.constant 0.000000e+00 : f32
    %29 = vector.broadcast %cst_19 : f32 to vector<8x256xf32>
    %30 = arith.cmpf ogt, %28, %29 : vector<8x256xf32>
    %cst_20 = arith.constant 0.00999999977 : f32
    %31 = vector.broadcast %cst_20 : f32 to vector<8x256xf32>
    %32 = arith.mulf %31, %28 : vector<8x256xf32>
    %33 = arith.select %30, %28, %32 : vector<8x256xi1>, vector<8x256xf32>
    %34 = arith.truncf %33 : vector<8x256xf32> to vector<8x256xbf16>
    %c0_21 = arith.constant 0 : index
    %c0_22 = arith.constant 0 : index
    %35 = vector.load %arg8[%c0_21, %c0_22] : memref<256x256xbf16, #tpu.memory_space<vmem>>, vector<256x256xbf16>
    %cst_23 = arith.constant dense<0.000000e+00> : vector<8x256xf32>
    %36 = tpu.matmul %34, %35, %cst_23 {dimension_numbers = #tpu.dot_dimension_numbers<[1], [0], [0], [1], [0, 0, 1, 1], [], []>} : vector<8x256xbf16>, vector<256x256xbf16>, vector<8x256xf32> -> vector<8x256xf32>
    %c0_24 = arith.constant 0 : index
    %c0_25 = arith.constant 0 : index
    %37 = vector.load %arg9[%c0_24, %c0_25] : memref<1x256xf32, #tpu.memory_space<vmem>>, vector<1x256xf32>
    %38 = vector.broadcast %37 : vector<1x256xf32> to vector<8x256xf32>
    %39 = arith.addf %36, %38 : vector<8x256xf32>
    %cst_26 = arith.constant 0.000000e+00 : f32
    %40 = vector.broadcast %cst_26 : f32 to vector<8x256xf32>
    %41 = arith.cmpf ogt, %39, %40 : vector<8x256xf32>
    %cst_27 = arith.constant 0.00999999977 : f32
    %42 = vector.broadcast %cst_27 : f32 to vector<8x256xf32>
    %43 = arith.mulf %42, %39 : vector<8x256xf32>
    %44 = arith.select %41, %39, %43 : vector<8x256xi1>, vector<8x256xf32>
    %45 = arith.truncf %44 : vector<8x256xf32> to vector<8x256xbf16>
    %c0_28 = arith.constant 0 : index
    %c0_29 = arith.constant 0 : index
    %46 = vector.load %arg10[%c0_28, %c0_29] : memref<256x8xbf16, #tpu.memory_space<vmem>>, vector<256x8xbf16>
    %cst_30 = arith.constant dense<0.000000e+00> : vector<8x8xf32>
    %47 = tpu.matmul %45, %46, %cst_30 {dimension_numbers = #tpu.dot_dimension_numbers<[1], [0], [0], [1], [0, 0, 1, 1], [], []>} : vector<8x256xbf16>, vector<256x8xbf16>, vector<8x8xf32> -> vector<8x8xf32>
    %c0_31 = arith.constant 0 : index
    %c0_32 = arith.constant 0 : index
    %48 = vector.load %arg11[%c0_31, %c0_32] : memref<1x8xf32, #tpu.memory_space<vmem>>, vector<1x8xf32>
    %49 = vector.broadcast %48 : vector<1x8xf32> to vector<8x8xf32>
    %50 = arith.addf %47, %49 : vector<8x8xf32>
    %c0_33 = arith.constant 0 : index
    %c0_34 = arith.constant 0 : index
    %51 = vector.load %arg12[%c0_33, %c0_34] : memref<8x8xf32, #tpu.memory_space<vmem>>, vector<8x8xf32>
    tpu.vector_store %arg12[%c0_33, %c0_34], %50 {strides = array<i32>} : memref<8x8xf32, #tpu.memory_space<vmem>>, vector<8x8xf32>,
    return
  }
  func.func @transform_0(%arg0: i32) -> (i32, i32) {
    %c0_i32 = arith.constant 0 : i32
    %c0_i32_0 = arith.constant 0 : i32
    return %arg0, %c0_i32 : i32, i32
  }
  func.func @transform_1(%arg0: i32) -> (i32, i32) {
    %c0_i32 = arith.constant 0 : i32
    %c0_i32_0 = arith.constant 0 : i32
    %c0_i32_1 = arith.constant 0 : i32
    return %c0_i32, %c0_i32_0 : i32, i32
  }
  func.func @transform_2(%arg0: i32) -> (i32, i32) {
    %c0_i32 = arith.constant 0 : i32
    %c0_i32_0 = arith.constant 0 : i32
    %c0_i32_1 = arith.constant 0 : i32
    return %c0_i32, %c0_i32_0 : i32, i32
  }
  func.func @transform_3(%arg0: i32) -> (i32, i32) {
    %c0_i32 = arith.constant 0 : i32
    %c0_i32_0 = arith.constant 0 : i32
    %c0_i32_1 = arith.constant 0 : i32
    return %c0_i32, %c0_i32_0 : i32, i32
  }
  func.func @transform_4(%arg0: i32) -> (i32, i32) {
    %c0_i32 = arith.constant 0 : i32
    %c0_i32_0 = arith.constant 0 : i32
    %c0_i32_1 = arith.constant 0 : i32
    return %c0_i32, %c0_i32_0 : i32, i32
  }
  func.func @transform_5(%arg0: i32) -> (i32, i32) {
    %c0_i32 = arith.constant 0 : i32
    %c0_i32_0 = arith.constant 0 : i32
    %c0_i32_1 = arith.constant 0 : i32
    return %c0_i32, %c0_i32_0 : i32, i32
  }
  func.func @transform_6(%arg0: i32) -> (i32, i32) {
    %c0_i32 = arith.constant 0 : i32
    %c0_i32_0 = arith.constant 0 : i32
    %c0_i32_1 = arith.constant 0 : i32
    return %c0_i32, %c0_i32_0 : i32, i32
  }
  func.func @transform_7(%arg0: i32) -> (i32, i32) {
    %c0_i32 = arith.constant 0 : i32
    %c0_i32_0 = arith.constant 0 : i32
    %c0_i32_1 = arith.constant 0 : i32
    return %c0_i32, %c0_i32_0 : i32, i32
  }
  func.func @transform_8(%arg0: i32) -> (i32, i32) {
    %c0_i32 = arith.constant 0 : i32
    %c0_i32_0 = arith.constant 0 : i32
    %c0_i32_1 = arith.constant 0 : i32
    return %c0_i32, %c0_i32_0 : i32, i32
  }
  func.func @transform_9(%arg0: i32) -> (i32, i32) {
    %c0_i32 = arith.constant 0 : i32
    %c0_i32_0 = arith.constant 0 : i32
    %c0_i32_1 = arith.constant 0 : i32
    return %c0_i32, %c0_i32_0 : i32, i32
  }
  func.func @transform_10(%arg0: i32) -> (i32, i32) {
    %c0_i32 = arith.constant 0 : i32
    %c0_i32_0 = arith.constant 0 : i32
    %c0_i32_1 = arith.constant 0 : i32
    return %c0_i32, %c0_i32_0 : i32, i32
  }
  func.func @transform_11(%arg0: i32) -> (i32, i32) {
    %c0_i32 = arith.constant 0 : i32
    %c0_i32_0 = arith.constant 0 : i32
    return %arg0, %c0_i32 : i32, i32
  }
}

</mosaic_0001>

<bundles_post_ra>
// kernel: affine_classifier_forward.1
= control target key start
LH: loop header
LB: loop body
LE: loop exit
PB: predicated region body
PF: predicated region fallthrough
CT: control target
= control target key end

     0   :  { %16 = vsyncpa [#allocation3], 0  ;;  %s1727_s0 = inlined_call_operand.vmem [shape: f32[8,6], index: 0, kind: input, shape index: {}]   ;;  %s1728_s1 = inlined_call_operand.vmem [shape: bf16[6,256], index: 1, kind: input, shape index: {}]   ;;  %s1729_s2 = inlined_call_operand.vmem [shape: f32[1,256], index: 2, kind: input, shape index: {}]   ;;  %s1730_s3 = inlined_call_operand.hbm [shape: bf16[256,256], index: 3, kind: input, shape index: {}]   ;;  %s1731_s4 = inlined_call_operand.vmem [shape: f32[1,256], index: 4, kind: input, shape index: {}]   ;;  %s1732_s5 = inlined_call_operand.hbm [shape: bf16[256,256], index: 5, kind: input, shape index: {}]   ;;  %s1733_s6 = inlined_call_operand.vmem [shape: f32[1,256], index: 6, kind: input, shape index: {}]   ;;  %s1734_s7 = inlined_call_operand.hbm [shape: bf16[256,256], index: 7, kind: input, shape index: {}]   ;;  %s1735_s8 = inlined_call_operand.vmem [shape: f32[1,256], index: 8, kind: input, shape index: {}]   ;;  %s1736_s9 = inlined_call_operand.vmem [shape: bf16[256,8], index: 9, kind: input, shape index: {}]   ;;  %s1737_s10 = inlined_call_operand.vmem [shape: f32[1,8], index: 10, kind: input, shape index: {}]   ;;  %s1738_s11 = inlined_call_operand.hbm [shape: f32[8,8], index: 11, kind: output, shape index: {}]  }
   0x1   :  { %17 = vsyncpa [#allocation6], 0 }
   0x2   :  { %18 = vsyncpa [#allocation4], 0  ;;  %s1515_s17 = smov [#allocation5]   ;;  %s1516_s19 = smov [#allocation2]  }
   0x3   :  { %s44_s18 = sshll.u32 %s1515_s17, 4  ;;  %s30_s20 = sshll.u32 %s1516_s19, 4  ;;  %s45_s18 = int_to_ptr.vmem [resolvable:$true] %s44_s18  ;;  %s1582_s20 = int_to_ptr.vmem [resolvable:$true] %s30_s20 }
   0x4   :  { %s1421_s23 = scalar_lea.hbm %s1732_s5, 4096 }
   0x5   :  { %p1422_p0 = scmp.ne.s32.totalorder %s1732_s5, %s1421_s23  ;;  %p1425_p1 = scmp.lt.u32.totalorder %s1421_s23, %s1732_s5 }
   0x7   :  { %p1427_p2 = pnand %p1425_p1, %p1422_p0 }
   0x9   :  { %1430 = shalt.err (!%p1427_p2)
}
   0xa   :  { %s1431_s28 = scalar_lea.vmem %s45_s18, 4096  ;;  %p1436_p4 = scmp.lt.s32.totalorder %s45_s18, %s45_s18 }
   0xb   :  { %p1432_p3 = scmp.ne.s32.totalorder %s45_s18, %s1431_s28  ;;  %p1437_p5 = scmp.lt.s32.totalorder %s1431_s28, %s1431_s28 }
   0xd   :  { %p1438_p6 = por %p1437_p5, %p1436_p4 }
   0xf   :  { %p1439_p7 = pnand %p1438_p6, %p1432_p3 }
  0x11   :  { %1442 = shalt.err (!%p1439_p7)
}
  0x12   :  { %s1517_s29 = smov 128   ;;  %s1518_s30 = smov 8  }
  0x13   :  { %50 = dma.hbm_to_vmem [thread:$0]  %s1732_s5, 4096, %s45_s18, [#allocation6], %s1517_s29, %s1517_s29, %s1518_s30  }
  0x14   :  { %s1443_s16 = scalar_lea.hbm %s1730_s3, 4096 }
  0x15   :  { %p1444_p8 = scmp.ne.s32.totalorder %s1730_s3, %s1443_s16  ;;  %p1447_p9 = scmp.lt.u32.totalorder %s1443_s16, %s1730_s3 }
  0x17   :  { %p1449_p10 = pnand %p1447_p9, %p1444_p8 }
  0x19   :  { %1452 = shalt.err (!%p1449_p10)
}
  0x1a   :  { %s1453_s23 = scalar_lea.vmem %s1582_s20, 4096  ;;  %p1458_p12 = scmp.lt.s32.totalorder %s1582_s20, %s1582_s20 }
  0x1b   :  { %p1454_p11 = scmp.ne.s32.totalorder %s1582_s20, %s1453_s23  ;;  %p1459_p13 = scmp.lt.s32.totalorder %s1453_s23, %s1453_s23 }
  0x1d   :  { %p1460_p0 = por %p1459_p13, %p1458_p12 }
  0x1f   :  { %p1461_p1 = pnand %p1460_p0, %p1454_p11 }
  0x21   :  { %1464 = shalt.err (!%p1461_p1)
}
  0x22   :  { %36 = dma.hbm_to_vmem [thread:$0]  %s1730_s3, 4096, %s1582_s20, [#allocation3], %s1517_s29, %s1517_s29, %s1518_s30  }
  0x23   :  { %s1519_s24 = smov [#allocation7]   ;;  %s1465_s28 = scalar_lea.hbm %s1734_s7, 4096 }
  0x24   :  { %s58_s25 = sshll.u32 %s1519_s24, 4  ;;  %p1466_p2 = scmp.ne.s32.totalorder %s1734_s7, %s1465_s28  ;;  %s59_s25 = int_to_ptr.vmem [resolvable:$true] %s58_s25 }
  0x25   :  { %p1469_p3 = scmp.lt.u32.totalorder %s1465_s28, %s1734_s7 }
  0x27   :  { %p1471_p4 = pnand %p1469_p3, %p1466_p2 }
  0x29   :  { %1474 = shalt.err (!%p1471_p4)
}
  0x2a   :  { %s1475_s16 = scalar_lea.vmem %s59_s25, 4096  ;;  %p1480_p6 = scmp.lt.s32.totalorder %s59_s25, %s59_s25 }
  0x2b   :  { %p1476_p5 = scmp.ne.s32.totalorder %s59_s25, %s1475_s16  ;;  %p1481_p7 = scmp.lt.s32.totalorder %s1475_s16, %s1475_s16 }
  0x2d   :  { %p1482_p8 = por %p1481_p7, %p1480_p6 }
  0x2f   :  { %p1483_p9 = pnand %p1482_p8, %p1476_p5 }
  0x31   :  { %1486 = shalt.err (!%p1483_p9)
}
  0x32   :  { %64 = dma.hbm_to_vmem [thread:$0]  %s1734_s7, 4096, %s59_s25, [#allocation6], %s1517_s29, %s1517_s29, %s1518_s30  }
  0x33   :  { %1509 = dma.done.wait [#allocation3], 4096  }
  0x34   :  { %1510 = vsyncadd [#allocation3], 4294963200 }
  0x35   :  { %1511 = dma.done.wait [#allocation6], 8192  }
  0x36   :  { %1512 = vsyncadd [#allocation6], 4294959104  ;;  %v1520_v0 = vmov 0   ;;  %v83_v1 = vld [vmem:[%s1728_s1] sm:$0x77]  ;;  %vm105_vm0 = vcmask 1042432  }
  0x37   :  { %144 = vmatprep.mubr.bf16.mxu0 %v1520_v0  ;;  %v81_v2 = vld [vmem:[%s1727_s0] sm:$0xff]  ;;  %v1114_v3 = vcombine.high %v83_v1, %v83_v1  ;;  %v1113_v4 = vcombine.low %v83_v1, %v83_v1  ;;  %v1264_v7 = vld [vmem:[#allocation2 + $0x14] ss:$8 sps:$4 sm:$0xff]   ;;  %vm101_vm1 = vcmask 48128   ;;  %v1266_v10 = vld [vmem:[#allocation2 + $0x10] ss:$8 sps:$4 sm:$0xff]  }
  0x38   :  { %v1261_v5 = vld [vmem:[#allocation2 + $0x4] ss:$8 sps:$4 sm:$0xff]   ;;  %v1263_v6 = vld [vmem:[#allocation2] ss:$8 sps:$4 sm:$0xff]   ;;  %v82_v9 = vpack.c.bf16 %v81_v2, %v81_v2  ;;  %v1270_v13 = vld [vmem:[#allocation2 + $0x34] ss:$8 sps:$4 sm:$0xff]  }
  0x39   :  { %1115 = vmatprep.subr.msk.bf16.mxu0 %vm105_vm0, %v1114_v3  ;;  %v107_v8 = vsel %vm105_vm0, %v1113_v4, 0  ;;  %365 = vmatprep.subr.bf16.mxu1 %v1261_v5  ;;  %v1267_v11 = vld [vmem:[#allocation2 + $0x24] ss:$8 sps:$4 sm:$0xff]   ;;  %v1269_v12 = vld [vmem:[#allocation2 + $0x20] ss:$8 sps:$4 sm:$0xff]   ;;  %v86_v3 = vlaneseq  ;;  %s1521_s27 = smov [#allocation8]  }
  0x3a   :  { %113 = vmatpush1.bf16.msra.mxu0 %v107_v8  ;;  %366 = vmatpush1.bf16.msra.mxu1 %v1263_v6  ;;  %v1272_v14 = vld [vmem:[#allocation2 + $0x30] ss:$8 sps:$4 sm:$0xff]   ;;  %v1273_v15 = vld [vmem:[#allocation2 + $0x44] ss:$8 sps:$4 sm:$0xff]   ;;  %v1275_v16 = vld [vmem:[#allocation2 + $0x40] ss:$8 sps:$4 sm:$0xff]  }
  0x3b   :  { %367 = vmatprep.subr.bf16.mxu1 %v1264_v7  ;;  %v1276_v17 = vld [vmem:[#allocation2 + $0x54] ss:$8 sps:$4 sm:$0xff]   ;;  %v1278_v18 = vld [vmem:[#allocation2 + $0x50] ss:$8 sps:$4 sm:$0xff]   ;;  %v1279_v19 = vld [vmem:[#allocation2 + $0x64] ss:$8 sps:$4 sm:$0xff]  }
  0x3c   :  { %v1281_v20 = vld [vmem:[#allocation2 + $0x60] ss:$8 sps:$4 sm:$0xff]   ;;  %v1282_v21 = vld [vmem:[#allocation2 + $0x74] ss:$8 sps:$4 sm:$0xff]   ;;  %v1284_v22 = vld [vmem:[#allocation2 + $0x70] ss:$8 sps:$4 sm:$0xff]  }
  0x3d   :  { %1116 = vmatmul.mubr.msk.bf16.vlgmr.msra.gmra.mrb[0].mxu0 %vm101_vm1, %v82_v9  ;;  %v1285_v23 = vld [vmem:[#allocation2 + $0x84] ss:$8 sps:$4 sm:$0xff]   ;;  %v1287_v24 = vld [vmem:[#allocation2 + $0x80] ss:$8 sps:$4 sm:$0xff]   ;;  %v1288_v25 = vld [vmem:[#allocation2 + $0x94] ss:$8 sps:$4 sm:$0xff]  }
  0x3e   :  { %368 = vmatpush1.bf16.msra.mxu1 %v1266_v10  ;;  %v1290_v26 = vld [vmem:[#allocation2 + $0x90] ss:$8 sps:$4 sm:$0xff]   ;;  %v1291_v27 = vld [vmem:[#allocation2 + $0xa4] ss:$8 sps:$4 sm:$0xff]   ;;  %v1293_v28 = vld [vmem:[#allocation2 + $0xa0] ss:$8 sps:$4 sm:$0xff]  }
  0x3f   :  { %369 = vmatprep.subr.bf16.mxu1 %v1267_v11  ;;  %v1294_v29 = vld [vmem:[#allocation2 + $0xb4] ss:$8 sps:$4 sm:$0xff]   ;;  %v1296_v30 = vld [vmem:[#allocation2 + $0xb0] ss:$8 sps:$4 sm:$0xff]   ;;  %v1297_v31 = vld [vmem:[#allocation2 + $0xc4] ss:$8 sps:$4 sm:$0xff]  }
  0x40   :  { %v1299_v32 = vld [vmem:[#allocation2 + $0xc0] ss:$8 sps:$4 sm:$0xff]   ;;  %v1300_v33 = vld [vmem:[#allocation2 + $0xd4] ss:$8 sps:$4 sm:$0xff]   ;;  %v1302_v34 = vld [vmem:[#allocation2 + $0xd0] ss:$8 sps:$4 sm:$0xff]  }
  0x41   :  { %v1303_v35 = vld [vmem:[#allocation2 + $0xe4] ss:$8 sps:$4 sm:$0xff]   ;;  %v1305_v36 = vld [vmem:[#allocation2 + $0xe0] ss:$8 sps:$4 sm:$0xff]   ;;  %v1306_v37 = vld [vmem:[#allocation2 + $0xf4] ss:$8 sps:$4 sm:$0xff]  }
  0x42   :  { %370 = vmatpush1.bf16.msra.mxu1 %v1269_v12  ;;  %v1308_v38 = vld [vmem:[#allocation2 + $0xf0] ss:$8 sps:$4 sm:$0xff]   ;;  %v1309_v39 = vld [vmem:[#allocation5] ss:$8 sps:$4 sm:$0xff]   ;;  %v1311_v40 = vld [vmem:[#allocation5 + $0x4] ss:$8 sps:$4 sm:$0xff]  }
  0x43   :  { %371 = vmatprep.subr.bf16.mxu1 %v1270_v13  ;;  %v1314_v41 = vld [vmem:[#allocation5 + $0x14] ss:$8 sps:$4 sm:$0xff]   ;;  %618 = vmatprep.subr.bf16.mxu0 %v1311_v40  ;;  %v1312_v42 = vld [vmem:[#allocation5 + $0x10] ss:$8 sps:$4 sm:$0xff]   ;;  %v1317_v43 = vld [vmem:[#allocation5 + $0x24] ss:$8 sps:$4 sm:$0xff]  }
  0x44   :  { %619 = vmatpush1.bf16.msra.mxu0 %v1309_v39  ;;  %v1315_v44 = vld [vmem:[#allocation5 + $0x20] ss:$8 sps:$4 sm:$0xff]   ;;  %v1320_v45 = vld [vmem:[#allocation5 + $0x34] ss:$8 sps:$4 sm:$0xff]   ;;  %v1318_v46 = vld [vmem:[#allocation5 + $0x30] ss:$8 sps:$4 sm:$0xff]  }
  0x45   :  { %620 = vmatprep.subr.bf16.mxu0 %v1314_v41  ;;  %v1323_v47 = vld [vmem:[#allocation5 + $0x44] ss:$8 sps:$4 sm:$0xff]   ;;  %v1321_v48 = vld [vmem:[#allocation5 + $0x40] ss:$8 sps:$4 sm:$0xff]   ;;  %v1326_v49 = vld [vmem:[#allocation5 + $0x54] ss:$8 sps:$4 sm:$0xff]  }
  0x46   :  { %372 = vmatpush1.bf16.msra.mxu1 %v1272_v14  ;;  %v1324_v50 = vld [vmem:[#allocation5 + $0x50] ss:$8 sps:$4 sm:$0xff]   ;;  %v1329_v51 = vld [vmem:[#allocation5 + $0x64] ss:$8 sps:$4 sm:$0xff]   ;;  %v1327_v52 = vld [vmem:[#allocation5 + $0x60] ss:$8 sps:$4 sm:$0xff]  }
  0x47   :  { %373 = vmatprep.subr.bf16.mxu1 %v1273_v15  ;;  %v1332_v53 = vld [vmem:[#allocation5 + $0x74] ss:$8 sps:$4 sm:$0xff]   ;;  %v1330_v54 = vld [vmem:[#allocation5 + $0x70] ss:$8 sps:$4 sm:$0xff]   ;;  %v1335_v55 = vld [vmem:[#allocation5 + $0x84] ss:$8 sps:$4 sm:$0xff]  }
  0x48   :  { %621 = vmatpush1.bf16.msra.mxu0 %v1312_v42  ;;  %v1333_v56 = vld [vmem:[#allocation5 + $0x80] ss:$8 sps:$4 sm:$0xff]   ;;  %v1338_v57 = vld [vmem:[#allocation5 + $0x94] ss:$8 sps:$4 sm:$0xff]   ;;  %v1336_v58 = vld [vmem:[#allocation5 + $0x90] ss:$8 sps:$4 sm:$0xff]  }
  0x49   :  { %622 = vmatprep.subr.bf16.mxu0 %v1317_v43  ;;  %v1341_v59 = vld [vmem:[#allocation5 + $0xa4] ss:$8 sps:$4 sm:$0xff]   ;;  %v1339_v60 = vld [vmem:[#allocation5 + $0xa0] ss:$8 sps:$4 sm:$0xff]   ;;  %v1344_v61 = vld [vmem:[#allocation5 + $0xb4] ss:$8 sps:$4 sm:$0xff]  }
  0x4a   :  { %374 = vmatpush1.bf16.msra.mxu1 %v1275_v16  ;;  %v1342_v62 = vld [vmem:[#allocation5 + $0xb0] ss:$8 sps:$4 sm:$0xff]   ;;  %v1347_v63 = vld [vmem:[#allocation5 + $0xc4] ss:$8 sps:$4 sm:$0xff]   ;;  %v1345_v0 = vld [vmem:[#allocation5 + $0xc0] ss:$8 sps:$4 sm:$0xff]  }
  0x4b   :  { %375 = vmatprep.subr.bf16.mxu1 %v1276_v17  ;;  %v1350_v1 = vld [vmem:[#allocation5 + $0xd4] ss:$8 sps:$4 sm:$0xff]   ;;  %v1348_v2 = vld [vmem:[#allocation5 + $0xd0] ss:$8 sps:$4 sm:$0xff]   ;;  %v87_v4 = vshrl.u32 %v86_v3, 7  ;;  %s1103_s28 = sshll.u32 %s1521_s27, 4  ;;  %s1104_s28 = int_to_ptr.vmem [resolvable:$true] %s1103_s28 }
  0x4c   :  { %623 = vmatpush1.bf16.msra.mxu0 %v1315_v44  ;;  %v84_v6 = vld [vmem:[%s1729_s2] sm:$0x3]  ;;  %v1380_v40 = vld [vmem:[#allocation7 + $0x74] ss:$8 sps:$4 sm:$0xff]   ;;  %v1378_v41 = vld [vmem:[#allocation7 + $0x70] ss:$8 sps:$4 sm:$0xff]   ;;  %p1492_p11 = scmp.lt.s32.totalorder %s1104_s28, %s1104_s28 }
  0x4d   :  { %624 = vmatprep.subr.bf16.mxu0 %v1320_v45  ;;  %v1640_v5 = vsub.s32 0, %v87_v4  ;;  %v1645_v7 = vsub.s32 1, %v87_v4  ;;  %v1375_v39 = vld [vmem:[#allocation7 + $0x60] ss:$8 sps:$4 sm:$0xff]   ;;  %v1383_v42 = vld [vmem:[#allocation7 + $0x84] ss:$8 sps:$4 sm:$0xff]  }
  0x4e   :  { %376 = vmatpush1.bf16.msra.mxu1 %v1278_v18  ;;  %v1381_v43 = vld [vmem:[#allocation7 + $0x80] ss:$8 sps:$4 sm:$0xff]   ;;  %v1386_v44 = vld [vmem:[#allocation7 + $0x94] ss:$8 sps:$4 sm:$0xff]   ;;  %v1384_v45 = vld [vmem:[#allocation7 + $0x90] ss:$8 sps:$4 sm:$0xff]  }
  0x4f   :  { %377 = vmatprep.subr.bf16.mxu1 %v1279_v19  ;;  %v89_v8 = vrot.slane %v84_v6, %v1640_v5  ;;  %v93_v9 = vrot.slane %v84_v6, %v1645_v7  ;;  %v1401_v6 = vld [vmem:[#allocation7 + $0xe4] ss:$8 sps:$4 sm:$0xff]   ;;  %vm1095_vm10 = vcmask 64512   ;;  %s1487_s12 = scalar_lea.vmem %s1104_s28, 128 }
  0x50   :  { %625 = vmatpush1.bf16.msra.mxu0 %v1318_v46  ;;  %v1389_v46 = vld [vmem:[#allocation7 + $0xa4] ss:$8 sps:$4 sm:$0xff]   ;;  %p1488_p10 = scmp.ne.s32.totalorder %s1104_s28, %s1487_s12  ;;  %p1493_p12 = scmp.lt.s32.totalorder %s1487_s12, %s1487_s12 }
  0x51   :  { %626 = vmatprep.subr.bf16.mxu0 %v1323_v47  ;;  %v1387_v47 = vld [vmem:[#allocation7 + $0xa0] ss:$8 sps:$4 sm:$0xff]  }
  0x52   :  { %378 = vmatpush1.bf16.msra.mxu1 %v1281_v20  ;;  %p1494_p13 = por %p1493_p12, %p1492_p11 }
  0x53   :  { %379 = vmatprep.subr.bf16.mxu1 %v1282_v21 }
  0x54   :  { %627 = vmatpush1.bf16.msra.mxu0 %v1321_v48  ;;  %v1392_v48 = vld [vmem:[#allocation7 + $0xb4] ss:$8 sps:$4 sm:$0xff]   ;;  %p1495_p0 = pnand %p1494_p13, %p1488_p10 }
  0x55   :  { %628 = vmatprep.subr.bf16.mxu0 %v1326_v49  ;;  %v1390_v49 = vld [vmem:[#allocation7 + $0xb0] ss:$8 sps:$4 sm:$0xff]  }
  0x56   :  { %380 = vmatpush1.bf16.msra.mxu1 %v1284_v22  ;;  %v1353_v22 = vld [vmem:[#allocation5 + $0xe4] ss:$8 sps:$4 sm:$0xff]  }
  0x57   :  { %381 = vmatprep.subr.bf16.mxu1 %v1285_v23  ;;  %v1351_v23 = vld [vmem:[#allocation5 + $0xe0] ss:$8 sps:$4 sm:$0xff]  }
  0x58   :  { %629 = vmatpush1.bf16.msra.mxu0 %v1324_v50  ;;  %v1395_v50 = vld [vmem:[#allocation7 + $0xc4] ss:$8 sps:$4 sm:$0xff]  }
  0x59   :  { %630 = vmatprep.subr.bf16.mxu0 %v1329_v51  ;;  %v1393_v51 = vld [vmem:[#allocation7 + $0xc0] ss:$8 sps:$4 sm:$0xff]  }
  0x5a   :  { %382 = vmatpush1.bf16.msra.mxu1 %v1287_v24  ;;  %v1356_v24 = vld [vmem:[#allocation5 + $0xf4] ss:$8 sps:$4 sm:$0xff]  }
  0x5b   :  { %383 = vmatprep.subr.bf16.mxu1 %v1288_v25  ;;  %v1354_v25 = vld [vmem:[#allocation5 + $0xf0] ss:$8 sps:$4 sm:$0xff]  }
  0x5c   :  { %631 = vmatpush1.bf16.msra.mxu0 %v1327_v52  ;;  %v1398_v52 = vld [vmem:[#allocation7 + $0xd4] ss:$8 sps:$4 sm:$0xff]  }
  0x5d   :  { %632 = vmatprep.subr.bf16.mxu0 %v1332_v53  ;;  %v1396_v53 = vld [vmem:[#allocation7 + $0xd0] ss:$8 sps:$4 sm:$0xff]  }
  0x5e   :  { %384 = vmatpush1.bf16.msra.mxu1 %v1290_v26  ;;  %v1357_v26 = vld [vmem:[#allocation7] ss:$8 sps:$4 sm:$0xff]  }
  0x5f   :  { %385 = vmatprep.subr.bf16.mxu1 %v1291_v27  ;;  %v1359_v27 = vld [vmem:[#allocation7 + $0x4] ss:$8 sps:$4 sm:$0xff]  }
  0x60   :  { %633 = vmatpush1.bf16.msra.mxu0 %v1330_v54  ;;  %v193_v54 = vld [vmem:[%s1731_s4] sm:$0x3] }
  0x61   :  { %634 = vmatprep.subr.bf16.mxu0 %v1335_v55  ;;  %v198_v55 = vrot.slane %v193_v54, %v1640_v5 }
  0x62   :  { %386 = vmatpush1.bf16.msra.mxu1 %v1293_v28  ;;  %v1362_v28 = vld [vmem:[#allocation7 + $0x14] ss:$8 sps:$4 sm:$0xff]  }
  0x63   :  { %387 = vmatprep.subr.bf16.mxu1 %v1294_v29  ;;  %v1360_v29 = vld [vmem:[#allocation7 + $0x10] ss:$8 sps:$4 sm:$0xff]  }
  0x64   :  { %635 = vmatpush1.bf16.msra.mxu0 %v1333_v56  ;;  %v202_v56 = vrot.slane %v193_v54, %v1645_v7 }
  0x65   :  { %636 = vmatprep.subr.bf16.mxu0 %v1338_v57 }
  0x66   :  { %388 = vmatpush1.bf16.msra.mxu1 %v1296_v30  ;;  %v1365_v30 = vld [vmem:[#allocation7 + $0x24] ss:$8 sps:$4 sm:$0xff]  }
  0x67   :  { %389 = vmatprep.subr.bf16.mxu1 %v1297_v31  ;;  %v1363_v31 = vld [vmem:[#allocation7 + $0x20] ss:$8 sps:$4 sm:$0xff]  }
  0x68   :  { %637 = vmatpush1.bf16.msra.mxu0 %v1336_v58 }
  0x69   :  { %638 = vmatprep.subr.bf16.mxu0 %v1341_v59 }
  0x6a   :  { %390 = vmatpush1.bf16.msra.mxu1 %v1299_v32  ;;  %v1368_v32 = vld [vmem:[#allocation7 + $0x34] ss:$8 sps:$4 sm:$0xff]  }
  0x6b   :  { %391 = vmatprep.subr.bf16.mxu1 %v1300_v33  ;;  %v1366_v33 = vld [vmem:[#allocation7 + $0x30] ss:$8 sps:$4 sm:$0xff]  }
  0x6c   :  { %639 = vmatpush1.bf16.msra.mxu0 %v1339_v60 }
  0x6d   :  { %640 = vmatprep.subr.bf16.mxu0 %v1344_v61 }
  0x6e   :  { %392 = vmatpush1.bf16.msra.mxu1 %v1302_v34  ;;  %v1371_v34 = vld [vmem:[#allocation7 + $0x44] ss:$8 sps:$4 sm:$0xff]  }
  0x6f   :  { %393 = vmatprep.subr.bf16.mxu1 %v1303_v35  ;;  %v1369_v35 = vld [vmem:[#allocation7 + $0x40] ss:$8 sps:$4 sm:$0xff]  }
  0x70   :  { %641 = vmatpush1.bf16.msra.mxu0 %v1342_v62 }
  0x71   :  { %642 = vmatprep.subr.bf16.mxu0 %v1347_v63 }
  0x72   :  { %394 = vmatpush1.bf16.msra.mxu1 %v1305_v36  ;;  %v1374_v36 = vld [vmem:[#allocation7 + $0x54] ss:$8 sps:$4 sm:$0xff]  }
  0x73   :  { %395 = vmatprep.subr.bf16.mxu1 %v1306_v37  ;;  %v1372_v37 = vld [vmem:[#allocation7 + $0x50] ss:$8 sps:$4 sm:$0xff]  }
  0x74   :  { %643 = vmatpush1.bf16.msra.mxu0 %v1345_v0 }
  0x75   :  { %644 = vmatprep.subr.bf16.mxu0 %v1350_v1 }
  0x76   :  { %396 = vmatpush1.bf16.msra.mxu1 %v1308_v38  ;;  %v1377_v38 = vld [vmem:[#allocation7 + $0x64] ss:$8 sps:$4 sm:$0xff]  }
  0x77   :  { %871 = vmatprep.subr.bf16.mxu1 %v1359_v27 }
  0x78   :  { %645 = vmatpush1.bf16.msra.mxu0 %v1348_v2 }
  0x79   :  { %646 = vmatprep.subr.bf16.mxu0 %v1353_v22  ;;  %v1416_v22 = vld [vmem:[%s1736_s9 + $0x28] sm:$0xff]  }
  0x7c   :  { %647 = vmatpush1.bf16.msra.mxu0 %v1351_v23  ;;  %v446_v23 = vld [vmem:[%s1733_s6] sm:$0x3] }
  0x7d   :  { %648 = vmatprep.subr.bf16.mxu0 %v1356_v24  ;;  %v451_v24 = vrot.slane %v446_v23, %v1640_v5 }
  0x80   :  { %649 = vmatpush1.bf16.msra.mxu0 %v1354_v25  ;;  %v455_v25 = vrot.slane %v446_v23, %v1645_v7 }
 0x110   :  { %v146_v10 = vpop.f32.mrb[0].mxu0 }
 0x111   :  { %v147_v11 = vadd.f32 %v146_v10, %v89_v8  ;;  %v148_v12 = vpop.f32.mrb[1].mxu0  ;;  %v1399_v8 = vld [vmem:[#allocation7 + $0xe0] ss:$8 sps:$4 sm:$0xff]   ;;  %v1402_v10 = vld [vmem:[#allocation7 + $0xf0] ss:$8 sps:$4 sm:$0xff]  }
 0x112   :  { %v149_v13 = vadd.f32 %v148_v12, %v93_v9  ;;  %v150_v14 = vpop.f32.mrb[2].mxu0  ;;  %v1404_v9 = vld [vmem:[#allocation7 + $0xf4] ss:$8 sps:$4 sm:$0xff]   ;;  %v1406_v12 = vld [vmem:[%s1736_s9] sm:$0xff]  }
 0x113   :  { %vm153_vm2 = vcmp.gt.f32.partialorder %v147_v11, 0.0  ;;  %v155_v15 = vmul.f32 0.01, %v147_v11  ;;  %v151_v16 = vpop.f32.mrb[3].mxu0  ;;  %v1408_v14 = vld [vmem:[%s1736_s9 + $0x8] sm:$0xff]  }
 0x114   :  { %vm154_vm3 = vcmp.gt.f32.partialorder %v149_v13, 0.0  ;;  %v156_v17 = vmul.f32 0.01, %v149_v13  ;;  %v1410_v16 = vld [vmem:[%s1736_s9 + $0x10] sm:$0xff]  }
 0x115   :  { %v157_v18 = vsel %vm153_vm2, %v147_v11, %v155_v15  ;;  %v1405_v11 = vld [vmem:[%s1736_s9 + $0x40] sm:$0xff]   ;;  %v1409_v15 = vld [vmem:[%s1736_s9 + $0x50] sm:$0xff]  }
 0x116   :  { %v158_v19 = vsel %vm154_vm3, %v149_v13, %v156_v17  ;;  %v159_v21 = vpack.c.bf16 %v157_v18, %v157_v18  ;;  %v1407_v13 = vld [vmem:[%s1736_s9 + $0x48] sm:$0xff]   ;;  %1230 = vmatprep.subr.bf16.mxu0 %v1405_v11  ;;  %v1411_v17 = vld [vmem:[%s1736_s9 + $0x58] sm:$0xff]  }
 0x117   :  { %v160_v20 = vpack.c.bf16 %v158_v19, %v158_v19  ;;  %v1412_v18 = vld [vmem:[%s1736_s9 + $0x18] sm:$0xff]   ;;  %v1413_v19 = vld [vmem:[%s1736_s9 + $0x60] sm:$0xff]  }
 0x119   :  { %397 = vmatprep.mubr.bf16.mxu1 %v160_v20  ;;  %v1414_v20 = vld [vmem:[%s1736_s9 + $0x20] sm:$0xff]  }
 0x11a   :  { %398 = vmatmul.mubr.bf16.vlgmr.msra.gmra.mrb[0].mxu1 %v159_v21  ;;  %v1415_v21 = vld [vmem:[%s1736_s9 + $0x68] sm:$0xff]  }
 0x11b   :  { %872 = vmatpush1.bf16.msra.mxu1 %v1357_v26 }
 0x11c   :  { %873 = vmatprep.subr.bf16.mxu1 %v1362_v28 }
 0x11f   :  { %874 = vmatpush1.bf16.msra.mxu1 %v1360_v29 }
 0x120   :  { %875 = vmatprep.subr.bf16.mxu1 %v1365_v30 }
 0x123   :  { %876 = vmatpush1.bf16.msra.mxu1 %v1363_v31 }
 0x124   :  { %877 = vmatprep.subr.bf16.mxu1 %v1368_v32 }
 0x127   :  { %878 = vmatpush1.bf16.msra.mxu1 %v1366_v33 }
 0x128   :  { %879 = vmatprep.subr.bf16.mxu1 %v1371_v34 }
 0x12b   :  { %880 = vmatpush1.bf16.msra.mxu1 %v1369_v35 }
 0x12c   :  { %881 = vmatprep.subr.bf16.mxu1 %v1374_v36 }
 0x12f   :  { %882 = vmatpush1.bf16.msra.mxu1 %v1372_v37 }
 0x130   :  { %883 = vmatprep.subr.bf16.mxu1 %v1377_v38  ;;  %v1417_v38 = vld [vmem:[%s1736_s9 + $0x70] sm:$0xff]  }
 0x133   :  { %884 = vmatpush1.bf16.msra.mxu1 %v1375_v39  ;;  %v1418_v39 = vld [vmem:[%s1736_s9 + $0x30] sm:$0xff]  }
 0x134   :  { %885 = vmatprep.subr.bf16.mxu1 %v1380_v40  ;;  %v1419_v40 = vld [vmem:[%s1736_s9 + $0x78] sm:$0xff]  }
 0x137   :  { %886 = vmatpush1.bf16.msra.mxu1 %v1378_v41  ;;  %v1420_v41 = vld [vmem:[%s1736_s9 + $0x38] sm:$0xff]  }
 0x138   :  { %887 = vmatprep.subr.bf16.mxu1 %v1383_v42  ;;  %v699_v42 = vld [vmem:[%s1735_s8] sm:$0x3] }
 0x13b   :  { %888 = vmatpush1.bf16.msra.mxu1 %v1381_v43  ;;  %v704_v43 = vrot.slane %v699_v42, %v1640_v5  ;;  %v1213_v5 = vld [vmem:[%s1737_s10] ss:$0 sm:$0xff] }
 0x13c   :  { %889 = vmatprep.subr.bf16.mxu1 %v1386_v44  ;;  %v708_v44 = vrot.slane %v699_v42, %v1645_v7 }
 0x13f   :  { %890 = vmatpush1.bf16.msra.mxu1 %v1384_v45 }
 0x140   :  { %891 = vmatprep.subr.bf16.mxu1 %v1389_v46 }
 0x143   :  { %892 = vmatpush1.bf16.msra.mxu1 %v1387_v47 }
 0x144   :  { %893 = vmatprep.subr.bf16.mxu1 %v1392_v48 }
 0x147   :  { %894 = vmatpush1.bf16.msra.mxu1 %v1390_v49 }
 0x148   :  { %895 = vmatprep.subr.bf16.mxu1 %v1395_v50 }
 0x14b   :  { %896 = vmatpush1.bf16.msra.mxu1 %v1393_v51 }
 0x14c   :  { %897 = vmatprep.subr.bf16.mxu1 %v1398_v52 }
 0x14f   :  { %898 = vmatpush1.bf16.msra.mxu1 %v1396_v53 }
 0x150   :  { %899 = vmatprep.subr.bf16.mxu1 %v1401_v6 }
 0x153   :  { %900 = vmatpush1.bf16.msra.mxu1 %v1399_v8 }
 0x154   :  { %901 = vmatprep.subr.bf16.mxu1 %v1404_v9 }
 0x157   :  { %902 = vmatpush1.bf16.msra.mxu1 %v1402_v10 }
 0x1ed   :  { %v399_v57 = vpop.f32.mrb[0].mxu1 }
 0x1ee   :  { %v400_v58 = vadd.f32 %v399_v57, %v198_v55  ;;  %v401_v59 = vpop.f32.mrb[1].mxu1 }
 0x1ef   :  { %v402_v60 = vadd.f32 %v401_v59, %v202_v56  ;;  %v403_v61 = vpop.f32.mrb[2].mxu1 }
 0x1f0   :  { %vm406_vm4 = vcmp.gt.f32.partialorder %v400_v58, 0.0  ;;  %v408_v62 = vmul.f32 0.01, %v400_v58  ;;  %v404_v63 = vpop.f32.mrb[3].mxu1 }
 0x1f1   :  { %vm407_vm5 = vcmp.gt.f32.partialorder %v402_v60, 0.0  ;;  %v409_v0 = vmul.f32 0.01, %v402_v60 }
 0x1f2   :  { %v410_v1 = vsel %vm406_vm4, %v400_v58, %v408_v62 }
 0x1f3   :  { %v411_v2 = vsel %vm407_vm5, %v402_v60, %v409_v0  ;;  %v412_v4 = vpack.c.bf16 %v410_v1, %v410_v1 }
 0x1f4   :  { %v413_v3 = vpack.c.bf16 %v411_v2, %v411_v2 }
 0x1f6   :  { %650 = vmatprep.mubr.bf16.mxu0 %v413_v3 }
 0x1f7   :  { %651 = vmatmul.mubr.bf16.vlgmr.msra.gmra.mrb[4].mxu0 %v412_v4 }
 0x1f8   :  { %1231 = vmatpush3.bf16.msra.mxu0 %v1406_v12 }
 0x1f9   :  { %1232 = vmatprep.subr.bf16.mxu0 %v1407_v13 }
 0x1fc   :  { %1233 = vmatpush3.bf16.msra.mxu0 %v1408_v14 }
 0x1fd   :  { %1234 = vmatprep.subr.bf16.mxu0 %v1409_v15 }
 0x200   :  { %1235 = vmatpush3.bf16.msra.mxu0 %v1410_v16 }
 0x201   :  { %1236 = vmatprep.subr.bf16.mxu0 %v1411_v17 }
 0x204   :  { %1237 = vmatpush3.bf16.msra.mxu0 %v1412_v18 }
 0x205   :  { %1238 = vmatprep.subr.bf16.mxu0 %v1413_v19 }
 0x208   :  { %1239 = vmatpush3.bf16.msra.mxu0 %v1414_v20 }
 0x209   :  { %1240 = vmatprep.subr.bf16.mxu0 %v1415_v21 }
 0x20c   :  { %1241 = vmatpush3.bf16.msra.mxu0 %v1416_v22 }
 0x20d   :  { %1242 = vmatprep.subr.bf16.mxu0 %v1417_v38 }
 0x210   :  { %1243 = vmatpush3.bf16.msra.mxu0 %v1418_v39 }
 0x211   :  { %1244 = vmatprep.subr.bf16.mxu0 %v1419_v40 }
 0x214   :  { %1245 = vmatpush3.bf16.msra.mxu0 %v1420_v41 }
 0x2ca   :  { %v652_v26 = vpop.f32.mrb[4].mxu0 }
 0x2cb   :  { %v653_v27 = vadd.f32 %v652_v26, %v451_v24  ;;  %v654_v28 = vpop.f32.mrb[5].mxu0 }
 0x2cc   :  { %v655_v29 = vadd.f32 %v654_v28, %v455_v25  ;;  %v656_v30 = vpop.f32.mrb[6].mxu0 }
 0x2cd   :  { %vm659_vm6 = vcmp.gt.f32.partialorder %v653_v27, 0.0  ;;  %v661_v31 = vmul.f32 0.01, %v653_v27  ;;  %v657_v32 = vpop.f32.mrb[7].mxu0 }
 0x2ce   :  { %vm660_vm7 = vcmp.gt.f32.partialorder %v655_v29, 0.0  ;;  %v662_v33 = vmul.f32 0.01, %v655_v29 }
 0x2cf   :  { %v663_v34 = vsel %vm659_vm6, %v653_v27, %v661_v31 }
 0x2d0   :  { %v664_v35 = vsel %vm660_vm7, %v655_v29, %v662_v33  ;;  %v665_v37 = vpack.c.bf16 %v663_v34, %v663_v34 }
 0x2d1   :  { %v666_v36 = vpack.c.bf16 %v664_v35, %v664_v35 }
 0x2d3   :  { %903 = vmatprep.mubr.bf16.mxu1 %v666_v36 }
 0x2d4   :  { %904 = vmatmul.mubr.bf16.vlgmr.msra.gmra.mrb[4].mxu1 %v665_v37 }
 0x3a7   :  { %v905_v45 = vpop.f32.mrb[4].mxu1 }
 0x3a8   :  { %v906_v46 = vadd.f32 %v905_v45, %v704_v43  ;;  %v907_v47 = vpop.f32.mrb[5].mxu1 }
 0x3a9   :  { %v908_v48 = vadd.f32 %v907_v47, %v708_v44  ;;  %v909_v49 = vpop.f32.mrb[6].mxu1 }
 0x3aa   :  { %vm912_vm8 = vcmp.gt.f32.partialorder %v906_v46, 0.0  ;;  %v914_v50 = vmul.f32 0.01, %v906_v46  ;;  %v910_v51 = vpop.f32.mrb[7].mxu1 }
 0x3ab   :  { %vm913_vm9 = vcmp.gt.f32.partialorder %v908_v48, 0.0  ;;  %v915_v52 = vmul.f32 0.01, %v908_v48 }
 0x3ac   :  { %v916_v53 = vsel %vm912_vm8, %v906_v46, %v914_v50 }
 0x3ad   :  { %v917_v54 = vsel %vm913_vm9, %v908_v48, %v915_v52  ;;  %v918_v56 = vpack.c.bf16 %v916_v53, %v916_v53 }
 0x3ae   :  { %v919_v55 = vpack.c.bf16 %v917_v54, %v917_v54 }
 0x3b0   :  { %1087 = vmatprep.mubr.bf16.mxu0 %v919_v55 }
 0x3b1   :  { %1088 = vmatmul.mubr.bf16.vlgmr.msra.gmra.mrb[8].mxu0 %v918_v56 }
 0x484   :  { %v1246_v57 = vpop.f32.mrb[8].mxu0 }
 0x485   :  { %v1247_v7 = vpop.f32.mrb[9].mxu0 }
 0x486   :  { %v1248_v58 = vadd.f32 %v1247_v7, %v1246_v57  ;;  %v1249_v59 = vpop.f32.mrb[10].mxu0 }
 0x487   :  { %v1250_v60 = vpop.f32.mrb[11].mxu0 }
 0x488   :  { %v1090_v61 = vadd.f32 %v1248_v58, %v1213_v5 }
 0x48a   :  { %1096 = vst.msk [vmem:[#allocation8] sm:$0xff] %vm1095_vm10, %v1090_v61 }
 0x48b   :  { %1498 = shalt.err (!%p1495_p0)
}
 0x48c   :  { %s1499_s10 = scalar_lea.hbm %s1738_s11, 128 }
 0x48d   :  { %p1500_p1 = scmp.ne.s32.totalorder %s1738_s11, %s1499_s10  ;;  %p1503_p2 = scmp.lt.u32.totalorder %s1499_s10, %s1738_s11 }
 0x48f   :  { %p1505_p3 = pnand %p1503_p2, %p1500_p1 }
 0x491   :  { %1508 = shalt.err (!%p1505_p3)
}
 0x492   :  { %1106 = dma.vmem_to_hbm [thread:$0]  %s1104_s28, 128, %s1738_s11, [#allocation4]  }
 0x493   :  { %1513 = dma.done.wait [#allocation4], 128  }
 0x494   :  { %1514 = vsyncadd [#allocation4], 4294967168 }
 0x495   :  { %1110 = vsyncpa [#allocation3], 1 }
 0x496   :  { %1111 = vsyncpa [#allocation6], 1 }
 0x497   :  { %1112 = vsyncpa [#allocation4], 1 }

</bundles_post_ra>
